<compile_context>
chip_gen: v7x
topology: tpu7x:2x2x1
jax: 0.10.0
libtpu: 0.0.40
codegen_flags: <defaults>
</compile_context>

<pallas_src>
import functools

import jax
import jax.numpy as jnp
from jax.experimental import pallas as pl
from jax.experimental.pallas import tpu as pltpu


def _round_up(x, m):
    return (x + m - 1) // m * m


def _vmem_budgets():
    """Return (vmem_limit_bytes, double-buffered-tile budget) for this TPU generation."""
    cap = None
    try:
        cap = getattr(pltpu.get_tpu_info(), "vmem_capacity_bytes", None)
    except Exception:
        cap = None
    if cap is None:
        cap = 64 * 1024 * 1024                       # unknown -> assume v7x (smallest VMEM)
    if cap >= 96 * 1024 * 1024:                      # v5e / v6e / v5p: 128 MiB physical
        return 64 * 1024 * 1024, 40 * 1024 * 1024
    return 48 * 1024 * 1024, 18 * 1024 * 1024        # v7x: 64 MiB physical, leave headroom


def _choose_block_rows(B, C, input_dtypes, tile_budget, with_lam):
    """Largest row tile (multiple of 8) whose double-buffered footprint fits the budget."""
    c_pad = _round_up(C, 128)                        # lane-padded columns
    bytes_per_row = 2 * sum(c_pad * jnp.dtype(dt).itemsize for dt in input_dtypes)
    bytes_per_row += 4 * c_pad * 4                   # headroom for f32 compute temporaries
    if with_lam:
        bytes_per_row += 2 * 128 * 4                 # lane-padded (tb,1) f32 lam, double-buffered
    tb = max(8, (tile_budget // bytes_per_row) // 8 * 8)
    tb = min(tb, _round_up(B, 8))
    # Guarantee enough grid steps for real pipelining (and for the 2-core split).
    if B >= 256:
        tb = min(tb, _round_up(pl.cdiv(B, 8), 8))
    elif B >= 64:
        tb = min(tb, _round_up(pl.cdiv(B, 4), 8))
    return tb


def _softplus(x):
    # max(x,0) + log1p(exp(-|x|)) : numerically stable softplus.
    return jnp.maximum(x, 0.0) + jnp.log1p(jnp.exp(-jnp.abs(x)))


def _mask_rows(row, tile_id, B, TB, need_mask):
    # Zero rows past the true batch size (partial tile / clamped duplicate tile).
    if need_mask:
        rid = tile_id * TB + jax.lax.broadcasted_iota(jnp.int32, (TB, 1), 0)
        row = jnp.where(rid < B, row, 0.0)
    return row


def _mixup_msml_kernel(x_ref, t1_ref, t2_ref, lam_ref, loss_ref, acc_ref,
                       *, B, TB, need_mask):
    c = pl.program_id(0)
    j = pl.program_id(1)
    nj = pl.num_programs(1)

    @pl.when(j == 0)
    def _():
        acc_ref[...] = jnp.zeros_like(acc_ref)

    x = x_ref[...].astype(jnp.float32)                       # (TB, C)
    t1 = t1_ref[...].astype(jnp.float32)                     # (TB, C)
    t2 = t2_ref[...].astype(jnp.float32)                     # (TB, C)
    lam = lam_ref[...].astype(jnp.float32)                   # (TB, 1)

    # Fused: sum_c(softplus(x) - x*t2) - lam * sum_c(x*(t1-t2))  -> 2 lane reductions.
    base = jnp.sum(_softplus(x) - x * t2, axis=-1, keepdims=True)   # (TB, 1)
    diff = jnp.sum(x * (t1 - t2), axis=-1, keepdims=True)           # (TB, 1)
    row = base - lam * diff

    row = _mask_rows(row, c * nj + j, B, TB, need_mask)
    acc_ref[...] += jnp.sum(row, keepdims=True)               # (1, 1) f32 running sum

    @pl.when(j == nj - 1)
    def _():
        loss_ref[...] = jnp.broadcast_to(acc_ref[...], loss_ref.shape)


def _plain_msml_kernel(x_ref, t1_ref, loss_ref, acc_ref, *, B, TB, need_mask):
    c = pl.program_id(0)
    j = pl.program_id(1)
    nj = pl.num_programs(1)

    @pl.when(j == 0)
    def _():
        acc_ref[...] = jnp.zeros_like(acc_ref)

    x = x_ref[...].astype(jnp.float32)                        # (TB, C)
    t1 = t1_ref[...].astype(jnp.float32)                      # (TB, C)

    # Fused: single lane reduction per tile.
    row = jnp.sum(_softplus(x) - x * t1, axis=-1, keepdims=True)    # (TB, 1)

    row = _mask_rows(row, c * nj + j, B, TB, need_mask)
    acc_ref[...] += jnp.sum(row, keepdims=True)

    @pl.when(j == nj - 1)
    def _():
        loss_ref[...] = jnp.broadcast_to(acc_ref[...], loss_ref.shape)


def _reduce_call(kernel, inputs, in_specs, grid, n_cores, vmem_limit):
    out = pl.pallas_call(
        kernel,
        # Lane-dense (8,128) per-core partial blocks (always layout-legal).
        out_shape=jax.ShapeDtypeStruct((n_cores * 8, 128), jnp.float32),
        grid_spec=pltpu.PrefetchScalarGridSpec(
            num_scalar_prefetch=0,
            grid=grid,
            in_specs=in_specs,
            out_specs=pl.BlockSpec((8, 128), lambda c, j: (c, 0)),
            scratch_shapes=[pltpu.VMEM((1, 1), jnp.float32)],
        ),
        compiler_params=pltpu.CompilerParams(
            dimension_semantics=("parallel", "arbitrary"),   # core shard x batch-tile loop
            vmem_limit_bytes=vmem_limit,
        ),
    )(*inputs)
    return out[0::8, 0]                                       # (n_cores,) per-core partial sums


def mixup_loss_targetmix(output, target1, target2=None, lmpas=None, mode=None,
                         block_rows=None):
    """JAX/Pallas equivalent of MixUpLoss_Targetmix(crit=MultiLabelSoftMarginLoss()).forward."""
    B, C = output.shape
    inv_n = 1.0 / float(B * C)
    vmem_limit, tile_budget = _vmem_budgets()

    if target2 is None:
        dtypes = (output.dtype, target1.dtype)
        tb = block_rows if block_rows is not None else _choose_block_rows(
            B, C, dtypes, tile_budget, with_lam=False)
        assert tb % 8 == 0
        num_tiles = pl.cdiv(B, tb)
        n_cores = 2 if num_tiles >= 2 else 1
        inner = pl.cdiv(num_tiles, n_cores)
        need_mask = (B % tb != 0) or (n_cores * inner != num_tiles)

        def tile_map(c, j):
            return (jnp.minimum(c * inner + j, num_tiles - 1), 0)

        kernel = functools.partial(_plain_msml_kernel, B=B, TB=tb, need_mask=need_mask)
        in_specs = [
            pl.BlockSpec((tb, C), tile_map),               # output logits
            pl.BlockSpec((tb, C), tile_map),               # target1
        ]
        partials = _reduce_call(kernel, (output, target1), in_specs,
                                grid=(n_cores, inner), n_cores=n_cores,
                                vmem_limit=vmem_limit)
        return jnp.sum(partials) * inv_n

    lam2d = jnp.reshape(lmpas, (B, 1))                     # == lmpas.unsqueeze(1)
    dtypes = (output.dtype, target1.dtype, target2.dtype)
    tb = block_rows if block_rows is not None else _choose_block_rows(
        B, C, dtypes, tile_budget, with_lam=True)
    assert tb % 8 == 0
    num_tiles = pl.cdiv(B, tb)
    n_cores = 2 if num_tiles >= 2 else 1
    inner = pl.cdiv(num_tiles, n_cores)
    need_mask = (B % tb != 0) or (n_cores * inner != num_tiles)

    def tile_map(c, j):
        return (jnp.minimum(c * inner + j, num_tiles - 1), 0)

    kernel = functools.partial(_mixup_msml_kernel, B=B, TB=tb, need_mask=need_mask)
    in_specs = [
        pl.BlockSpec((tb, C), tile_map),                   # output logits
        pl.BlockSpec((tb, C), tile_map),                   # target1
        pl.BlockSpec((tb, C), tile_map),                   # target2
        pl.BlockSpec((tb, 1), tile_map),                   # lmpas (B, 1), footprint budgeted
    ]
    partials = _reduce_call(kernel, (output, target1, target2, lam2d), in_specs,
                            grid=(n_cores, inner), n_cores=n_cores,
                            vmem_limit=vmem_limit)
    return jnp.sum(partials) * inv_n


# ----------------------------- pure-JAX references -----------------------------

def _reference_msml(output, targ):
    ls_p = jax.nn.log_sigmoid(output)
    ls_n = jax.nn.log_sigmoid(-output)
    per_elem = -(targ * ls_p + (1.0 - targ) * ls_n)
    return jnp.mean(jnp.mean(per_elem, axis=-1))


def _reference_mix(output, target1, target2, lmpas):
    targ = target1 * lmpas[:, None] + target2 * (1.0 - lmpas)[:, None]
    return _reference_msml(output, targ)


if __name__ == "__main__":
    key = jax.random.PRNGKey(0)
    k1, k2, k3, k4 = jax.random.split(key, 4)

    # --- test 1: mixup path, f32, single tile ---
    B, C = 8, 32
    output = jax.random.normal(k1, (B, C), dtype=jnp.float32)
    target1 = jax.random.bernoulli(k2, 0.3, (B, C)).astype(jnp.float32)
    target2 = jax.random.bernoulli(k3, 0.3, (B, C)).astype(jnp.float32)
    lmpas = jax.random.uniform(k4, (B,), dtype=jnp.float32)

    loss = jax.block_until_ready(mixup_loss_targetmix(output, target1, target2, lmpas))
    ref = _reference_mix(output, target1, target2, lmpas)
    assert jnp.allclose(loss, ref, rtol=1e-5, atol=1e-5), (loss, ref)

    # --- test 2: no-mixup path (target2 is None -> crit(output, target1).mean()) ---
    loss_plain = jax.block_until_ready(mixup_loss_targetmix(output, target1))
    ref_plain = _reference_msml(output, target1)
    assert jnp.allclose(loss_plain, ref_plain, rtol=1e-5, atol=1e-5), (loss_plain, ref_plain)

    # --- test 3: bf16 inputs, uneven batch, multi-tile grid (exercises 2-core split,
    #             per-core accumulators, clamped index maps, and the partial-tile mask) ---
    B2 = 13
    out2 = jax.random.normal(k1, (B2, C), dtype=jnp.bfloat16)
    t1_2 = jax.random.bernoulli(k2, 0.3, (B2, C)).astype(jnp.bfloat16)
    t2_2 = jax.random.bernoulli(k3, 0.3, (B2, C)).astype(jnp.bfloat16)
    lam2 = jax.random.uniform(k4, (B2,), dtype=jnp.float32)

    loss2 = jax.block_until_ready(
        mixup_loss_targetmix(out2, t1_2, t2_2, lam2, block_rows=8))
    ref2 = _reference_mix(out2.astype(jnp.float32), t1_2.astype(jnp.float32),
                          t2_2.astype(jnp.float32), lam2)
    assert jnp.allclose(loss2, ref2, rtol=1e-4, atol=1e-4), (loss2, ref2)

    # --- test 4: larger batch exercising _choose_block_rows + multi-step pipeline ---
    B3, C3 = 96, 160
    out3 = jax.random.normal(k1, (B3, C3), dtype=jnp.float32)
    t1_3 = jax.random.bernoulli(k2, 0.3, (B3, C3)).astype(jnp.float32)
    t2_3 = jax.random.bernoulli(k3, 0.3, (B3, C3)).astype(jnp.float32)
    lam3 = jax.random.uniform(k4, (B3,), dtype=jnp.float32)

    loss3 = jax.block_until_ready(mixup_loss_targetmix(out3, t1_3, t2_3, lam3))
    ref3 = _reference_mix(out3, t1_3, t2_3, lam3)
    assert jnp.allclose(loss3, ref3, rtol=1e-5, atol=1e-5), (loss3, ref3)

    print("KERNEL_OK")
</pallas_src>

<mosaic_0001>
module attributes {stable_mosaic.version = 11 : i64} {
  func.func @_mixup_msml_kernel(%arg0: i32, %arg1: i32, %arg2: memref<8x32xf32, #tpu.memory_space<vmem>>, %arg3: memref<8x32xf32, #tpu.memory_space<vmem>>, %arg4: memref<8x32xf32, #tpu.memory_space<vmem>>, %arg5: memref<8x1xf32, #tpu.memory_space<vmem>>, %arg6: memref<8x128xf32, #tpu.memory_space<vmem>>, %arg7: memref<1x1xf32, #tpu.memory_space<vmem>>) attributes {dimension_semantics = [#tpu.dimension_semantics<parallel>, #tpu.dimension_semantics<arbitrary>], iteration_bounds = array<i64: 1, 1>, scalar_prefetch = 0 : i64, scratch_operands = 1 : i64, tpu.core_type = #tpu.core_type<tc>, window_params = [{transform_indices = @transform_0, window_bounds = array<i64: 8, 32>}, {transform_indices = @transform_1, window_bounds = array<i64: 8, 32>}, {transform_indices = @transform_2, window_bounds = array<i64: 8, 32>}, {transform_indices = @transform_3, window_bounds = array<i64: 8, 1>}, {transform_indices = @transform_4, window_bounds = array<i64: 8, 128>}]} {
    %c0_i32 = arith.constant 0 : i32
    %0 = arith.cmpi eq, %arg1, %c0_i32 : i32
    %1 = arith.extui %0 : i1 to i32
    %c0_i32_0 = arith.constant 0 : i32
    %2 = arith.cmpi ne, %1, %c0_i32_0 : i32
    scf.if %2 {
      %cst_18 = arith.constant 0.000000e+00 : f32
      %36 = vector.broadcast %cst_18 : f32 to vector<1x1xf32>
      %c0_19 = arith.constant 0 : index
      %c0_20 = arith.constant 0 : index
      %37 = vector.load %arg7[%c0_19, %c0_20] : memref<1x1xf32, #tpu.memory_space<vmem>>, vector<1x1xf32>
      tpu.vector_store %arg7[%c0_19, %c0_20], %36 {strides = array<i32>} : memref<1x1xf32, #tpu.memory_space<vmem>>, vector<1x1xf32>,
    } else {
    }
    %c0 = arith.constant 0 : index
    %c0_1 = arith.constant 0 : index
    %3 = vector.load %arg2[%c0, %c0_1] : memref<8x32xf32, #tpu.memory_space<vmem>>, vector<8x32xf32>
    %c0_2 = arith.constant 0 : index
    %c0_3 = arith.constant 0 : index
    %4 = vector.load %arg3[%c0_2, %c0_3] : memref<8x32xf32, #tpu.memory_space<vmem>>, vector<8x32xf32>
    %c0_4 = arith.constant 0 : index
    %c0_5 = arith.constant 0 : index
    %5 = vector.load %arg4[%c0_4, %c0_5] : memref<8x32xf32, #tpu.memory_space<vmem>>, vector<8x32xf32>
    %c0_6 = arith.constant 0 : index
    %c0_7 = arith.constant 0 : index
    %6 = vector.load %arg5[%c0_6, %c0_7] : memref<8x1xf32, #tpu.memory_space<vmem>>, vector<8x1xf32>
    %cst = arith.constant 0.000000e+00 : f32
    %7 = vector.broadcast %cst : f32 to vector<8x32xf32>
    %8 = arith.maximumf %3, %7 : vector<8x32xf32>
    %9 = math.absf %3 : vector<8x32xf32>
    %cst_8 = arith.constant 0.000000e+00 : f32
    %10 = vector.broadcast %cst_8 : f32 to vector<8x32xf32>
    %11 = arith.subf %10, %9 : vector<8x32xf32>
    %12 = math.exp %11 : vector<8x32xf32>
    %13 = math.log1p %12 : vector<8x32xf32>
    %14 = arith.addf %8, %13 : vector<8x32xf32>
    %15 = arith.mulf %3, %5 : vector<8x32xf32>
    %16 = arith.subf %14, %15 : vector<8x32xf32>
    %cst_9 = arith.constant dense<0.000000e+00> : vector<8xf32>
    %17 = vector.multi_reduction <add>, %16, %cst_9 [1] : vector<8x32xf32> to vector<8xf32>
    %18 = vector.shape_cast %17 : vector<8xf32> to vector<8x1xf32>
    %19 = arith.subf %4, %5 : vector<8x32xf32>
    %20 = arith.mulf %3, %19 : vector<8x32xf32>
    %cst_10 = arith.constant dense<0.000000e+00> : vector<8xf32>
    %21 = vector.multi_reduction <add>, %20, %cst_10 [1] : vector<8x32xf32> to vector<8xf32>
    %22 = vector.shape_cast %21 : vector<8xf32> to vector<8x1xf32>
    %23 = arith.mulf %6, %22 : vector<8x1xf32>
    %24 = arith.subf %18, %23 : vector<8x1xf32>
    %c0_11 = arith.constant 0 : index
    %c0_12 = arith.constant 0 : index
    %25 = vector.load %arg7[%c0_11, %c0_12] : memref<1x1xf32, #tpu.memory_space<vmem>>, vector<1x1xf32>
    %26 = vector.shape_cast %24 : vector<8x1xf32> to vector<1x8x1xf32>
    %cst_13 = arith.constant dense<0.000000e+00> : vector<1xf32>
    %27 = vector.multi_reduction <add>, %26, %cst_13 [1, 2] : vector<1x8x1xf32> to vector<1xf32>
    %28 = vector.shape_cast %27 : vector<1xf32> to vector<1x1x1xf32>
    %29 = vector.extract %28[0, 0, 0] : f32 from vector<1x1x1xf32>
    %30 = vector.broadcast %29 : f32 to vector<1x1xf32>
    %31 = arith.addf %25, %30 : vector<1x1xf32>
    %c0_14 = arith.constant 0 : index
    %c0_15 = arith.constant 0 : index
    %32 = vector.load %arg7[%c0_14, %c0_15] : memref<1x1xf32, #tpu.memory_space<vmem>>, vector<1x1xf32>
    tpu.vector_store %arg7[%c0_14, %c0_15], %31 {strides = array<i32>} : memref<1x1xf32, #tpu.memory_space<vmem>>, vector<1x1xf32>,
    %c0_i32_16 = arith.constant 0 : i32
    %33 = arith.cmpi eq, %arg1, %c0_i32_16 : i32
    %34 = arith.extui %33 : i1 to i32
    %c0_i32_17 = arith.constant 0 : i32
    %35 = arith.cmpi ne, %34, %c0_i32_17 : i32
    scf.if %35 {
      %c0_18 = arith.constant 0 : index
      %c0_19 = arith.constant 0 : index
      %36 = vector.load %arg7[%c0_18, %c0_19] : memref<1x1xf32, #tpu.memory_space<vmem>>, vector<1x1xf32>
      %37 = vector.shape_cast %36 : vector<1x1xf32> to vector<1x1xf32>
      %38 = vector.broadcast %37 : vector<1x1xf32> to vector<8x128xf32>
      %c0_20 = arith.constant 0 : index
      %c0_21 = arith.constant 0 : index
      %39 = vector.load %arg6[%c0_20, %c0_21] : memref<8x128xf32, #tpu.memory_space<vmem>>, vector<8x128xf32>
      tpu.vector_store %arg6[%c0_20, %c0_21], %38 {strides = array<i32>} : memref<8x128xf32, #tpu.memory_space<vmem>>, vector<8x128xf32>,
    } else {
    }
    return
  }
  func.func @transform_0(%arg0: i32, %arg1: i32) -> (i32, i32) {
    %c1_i32 = arith.constant 1 : i32
    %0 = arith.muli %arg0, %c1_i32 : i32
    %1 = arith.addi %0, %arg1 : i32
    %c0_i32 = arith.constant 0 : i32
    %2 = arith.minsi %1, %c0_i32 : i32
    %c0_i32_0 = arith.constant 0 : i32
    %c0_i32_1 = arith.constant 0 : i32
    return %2, %c0_i32_0 : i32, i32
  }
  func.func @transform_1(%arg0: i32, %arg1: i32) -> (i32, i32) {
    %c1_i32 = arith.constant 1 : i32
    %0 = arith.muli %arg0, %c1_i32 : i32
    %1 = arith.addi %0, %arg1 : i32
    %c0_i32 = arith.constant 0 : i32
    %2 = arith.minsi %1, %c0_i32 : i32
    %c0_i32_0 = arith.constant 0 : i32
    %c0_i32_1 = arith.constant 0 : i32
    return %2, %c0_i32_0 : i32, i32
  }
  func.func @transform_2(%arg0: i32, %arg1: i32) -> (i32, i32) {
    %c1_i32 = arith.constant 1 : i32
    %0 = arith.muli %arg0, %c1_i32 : i32
    %1 = arith.addi %0, %arg1 : i32
    %c0_i32 = arith.constant 0 : i32
    %2 = arith.minsi %1, %c0_i32 : i32
    %c0_i32_0 = arith.constant 0 : i32
    %c0_i32_1 = arith.constant 0 : i32
    return %2, %c0_i32_0 : i32, i32
  }
  func.func @transform_3(%arg0: i32, %arg1: i32) -> (i32, i32) {
    %c1_i32 = arith.constant 1 : i32
    %0 = arith.muli %arg0, %c1_i32 : i32
    %1 = arith.addi %0, %arg1 : i32
    %c0_i32 = arith.constant 0 : i32
    %2 = arith.minsi %1, %c0_i32 : i32
    %c0_i32_0 = arith.constant 0 : i32
    %c0_i32_1 = arith.constant 0 : i32
    return %2, %c0_i32_0 : i32, i32
  }
  func.func @transform_4(%arg0: i32, %arg1: i32) -> (i32, i32) {
    %c0_i32 = arith.constant 0 : i32
    %c0_i32_0 = arith.constant 0 : i32
    return %arg0, %c0_i32 : i32, i32
  }
}

</mosaic_0001>

<bundles_post_ra>
// kernel: tpu_custom_call.1
= control target key start
LH: loop header
LB: loop body
LE: loop exit
PB: predicated region body
PF: predicated region fallthrough
CT: control target
= control target key end

     0   :  { %9 = vsyncpa [#allocation4], 0  ;;  %s349_s0 = inlined_call_operand.vmem [shape: f32[8,32], index: 0, kind: input, shape index: {}]   ;;  %s350_s1 = inlined_call_operand.hbm [shape: f32[8,32], index: 1, kind: input, shape index: {}]   ;;  %s351_s2 = inlined_call_operand.vmem [shape: f32[8,32], index: 2, kind: input, shape index: {}]   ;;  %s352_s3 = inlined_call_operand.vmem [shape: f32[8,1], index: 3, kind: input, shape index: {}]   ;;  %s353_s4 = inlined_call_operand.hbm [shape: f32[8,128], index: 4, kind: output, shape index: {}]  }
   0x1   :  { %10 = vsyncpa [#allocation5], 0  ;;  %s283_s15 = smov [#allocation3]   ;;  %s235_s19 = scalar_lea.hbm %s350_s1, 128 }
   0x2   :  { %s34_s16 = sshll.u32 %s283_s15, 4  ;;  %p236_p0 = scmp.ne.s32.totalorder %s350_s1, %s235_s19  ;;  %s35_s16 = int_to_ptr.vmem [resolvable:$true] %s34_s16 }
   0x3   :  { %p239_p1 = scmp.lt.u32.totalorder %s235_s19, %s350_s1 }
   0x5   :  { %p241_p2 = pnand %p239_p1, %p236_p0 }
   0x7   :  { %244 = shalt.err (!%p241_p2)
}
   0x8   :  { %s245_s24 = scalar_lea.vmem %s35_s16, 128  ;;  %p250_p4 = scmp.lt.s32.totalorder %s35_s16, %s35_s16 }
   0x9   :  { %p246_p3 = scmp.ne.s32.totalorder %s35_s16, %s245_s24  ;;  %p251_p5 = scmp.lt.s32.totalorder %s245_s24, %s245_s24 }
   0xb   :  { %p252_p6 = por %p251_p5, %p250_p4 }
   0xd   :  { %p253_p7 = pnand %p252_p6, %p246_p3 }
   0xf   :  { %256 = shalt.err (!%p253_p7)
}
  0x10   :  { %37 = dma.hbm_to_vmem [thread:$0]  %s350_s1, 128, %s35_s16, [#allocation4]  }
  0x11   :  { %279 = dma.done.wait [#allocation4], 128  }
  0x12   :  { %280 = vsyncadd [#allocation4], 4294967168  ;;  %v125_v0 = vld [vmem:[%s349_s0] sm:$0xff]  ;;  %vm146_vm0 = vcmask 261120   ;;  %vm158_vm2 = vcmask 7168   ;;  %vm123_vm3 = vcmask 0  }
  0x13   :  { %v126_v1 = vld [vmem:[#allocation3] sm:$0xff]  ;;  %v130_v4 = vand.u32 2147483647, %v125_v0  ;;  %v129_v16 = vmax.f32 %v125_v0, 0.0  ;;  %v284_v29 = vmov 0.0   ;;  %v285_v30 = vmov 0  }
  0x14   :  { %v127_v2 = vld [vmem:[%s351_s2] sm:$0xff]  ;;  %124 = vst.msk [vmem:[#allocation2] sm:$0x1] %vm123_vm3, %v284_v29  ;;  %229 = vset.pattern.permute.xlu1 %v285_v30  ;;  %230 = vset.pattern.permute.xlu0 %v285_v30 }
  0x15   :  { %v150_v3 = vsub.f32 %v126_v1, %v127_v2  ;;  %v131_v6 = vsub.f32 0.0, %v130_v4  ;;  %v144_v18 = vmul.f32 %v127_v2, %v125_v0  ;;  %v128_v24 = vld [vmem:[%s352_s3] sm:$0xff]  ;;  %s286_s3 = smov [#allocation6]  }
  0x16   :  { %s193_s5 = sshll.u32 %s286_s3, 4  ;;  %s194_s5 = int_to_ptr.vmem [resolvable:$true] %s193_s5 }
  0x17   :  { %v151_v5 = vmul.f32 %v150_v3, %v125_v0  ;;  %v132_v8 = vmul.f32 1.442695, %v131_v6  ;;  %s257_s6 = scalar_lea.vmem %s194_s5, 128  ;;  %p262_p9 = scmp.lt.s32.totalorder %s194_s5, %s194_s5 }
  0x18   :  { %p258_p8 = scmp.ne.s32.totalorder %s194_s5, %s257_s6  ;;  %p263_p10 = scmp.lt.s32.totalorder %s257_s6, %s257_s6 }
  0x19   :  { %v152_v7 = vsel %vm146_vm0, %v151_v5, 0.0  ;;  %231 = vpow2.f32 %v132_v8 }
  0x1a   :  { %153 = vadd.xlane.f32.xlu0 %v152_v7  ;;  %p264_p11 = por %p263_p10, %p262_p9 }
  0x1b   :  { %v157_v38 = vld [vmem:[#allocation2] sm:$0x1] }
  0x1c   :  { %p265_p12 = pnand %p264_p11, %p258_p8 }
  0x23   :  { %v232_v9 = vpop.eup %231 }
  0x24   :  { %v134_v10 = vadd.f32 1.0, %v232_v9  ;;  %v137_v11 = vmul.f32 -0.5, %v232_v9  ;;  %v140_v13 = vand.u32 2147483647, %v232_v9 }
  0x26   :  { %233 = vlog2.f32 %v134_v10  ;;  %v138_v12 = vadd.f32 1.0, %v137_v11  ;;  %vm141_vm1 = vcmp.lt.f32.partialorder %v140_v13, 0.0004427343 }
  0x28   :  { %v139_v14 = vmul.f32 %v232_v9, %v138_v12 }
  0x30   :  { %v234_v15 = vpop.eup %233 }
  0x31   :  { %v136_v17 = vmul.f32 0.6931472, %v234_v15 }
  0x33   :  { %v142_v19 = vsel %vm141_vm1, %v139_v14, %v136_v17 }
  0x34   :  { %v143_v20 = vadd.f32 %v142_v19, %v129_v16 }
  0x36   :  { %v145_v21 = vsub.f32 %v143_v20, %v144_v18 }
  0x38   :  { %v147_v22 = vsel %vm146_vm0, %v145_v21, 0.0 }
  0x39   :  { %148 = vadd.xlane.f32.xlu0 %v147_v22 }
  0xa7   :  { %v154_v23 = vpop.xlane.xlu0 %153 }
  0xa8   :  { %v155_v25 = vmul.f32 %v154_v23, %v128_v24 }
  0xc6   :  { %v149_v26 = vpop.xlane.xlu0 %148 }
  0xc7   :  { %v156_v27 = vsub.f32 %v149_v26, %v155_v25 }
  0xc9   :  { %v159_v28 = vsel %vm158_vm2, %v156_v27, 0.0 }
  0xca   :  { %160 = vadd.xlane.f32.xlu1 %v159_v28 }
 0x157   :  { %v161_v31 = vpop.xlane.xlu1 %160 }
 0x158   :  { %v162_v32 = vrot.slane %v161_v31, 4 }
 0x15a   :  { %v163_v33 = vadd.f32 %v162_v32, %v161_v31 }
 0x15c   :  { %v164_v34 = vrot.slane %v163_v33, 2 }
 0x15e   :  { %v165_v35 = vadd.f32 %v164_v34, %v163_v33 }
 0x160   :  { %v166_v36 = vrot.slane %v165_v35, 1 }
 0x162   :  { %v167_v37 = vadd.f32 %v166_v36, %v165_v35 }
 0x164   :  { %223 = vpush %v167_v37 }
 0x195   :  { %s224_s2 = spop %223 }
 0x196   :  { %v169_v39 = vstv %s224_s2 }
 0x197   :  { %v170_v40 = vadd.f32 %v169_v39, %v157_v38 }
 0x199   :  { %172 = vst.msk [vmem:[#allocation2] sm:$0x1] %vm123_vm3, %v170_v40 }
 0x1a0   :  { %v222_v41 = vld [vmem:[#allocation2] ss:$0 sm:$0xff] }
 0x1a1   :  { %183 = vperm.xlu1 %229, %v222_v41  }
 0x220   :  { %v184_v42 = vpop.permute.xlu1 %183 }
 0x221   :  { %186 = vst [vmem:[#allocation6] sm:$0xff] %v184_v42 }
 0x222   :  { %268 = shalt.err (!%p265_p12)
}
 0x223   :  { %s269_s9 = scalar_lea.hbm %s353_s4, 128 }
 0x224   :  { %p270_p13 = scmp.ne.s32.totalorder %s353_s4, %s269_s9  ;;  %p273_p0 = scmp.lt.u32.totalorder %s269_s9, %s353_s4 }
 0x226   :  { %p275_p1 = pnand %p273_p0, %p270_p13 }
 0x228   :  { %278 = shalt.err (!%p275_p1)
}
 0x229   :  { %196 = dma.vmem_to_hbm [thread:$0]  %s194_s5, 128, %s353_s4, [#allocation5]  }
 0x22a   :  { %281 = dma.done.wait [#allocation5], 128  }
 0x22b   :  { %282 = vsyncadd [#allocation5], 4294967168 }
 0x22c   :  { %200 = vsyncpa [#allocation4], 1 }
 0x22d   :  { %201 = vsyncpa [#allocation5], 1 }

</bundles_post_ra>
